<compile_context>
chip_gen: v7x
topology: tpu7x:2x2x1
jax: 0.10.0
libtpu: 0.0.40
codegen_flags: <defaults>
</compile_context>

<pallas_src>
import jax
import jax.numpy as jnp
from jax.experimental import pallas as pl
from jax.experimental.pallas import tpu as pltpu


def _mlp_kernel(x_ref, w1_ref, b1_ref, w2_ref, b2_ref, o_ref):
    # fc1: (TB, D_in) @ (D_in, H) + (1, H), then ReLU.
    h = jnp.dot(x_ref[...], w1_ref[...], preferred_element_type=jnp.float32)
    h = jnp.maximum(h + b1_ref[...], 0.0)
    # fc2: (TB, H) @ (H, D_out) + (1, D_out)
    out = jnp.dot(h, w2_ref[...], preferred_element_type=jnp.float32)
    o_ref[...] = (out + b2_ref[...]).astype(o_ref.dtype)


def prepare_params(fc1_weight, fc1_bias, fc2_weight, fc2_bias):
    """One-time model prep, hoisted out of the per-forward path.

    Takes PyTorch nn.Linear layout (weight: (out_features, in_features),
    bias: (out_features,)) and returns kernel layout:
      w: (in_features, out_features), b: (1, out_features)
    so the kernel's x @ W + b matches x @ weight.T + bias exactly.
    """
    return (jnp.asarray(fc1_weight).T, jnp.asarray(fc1_bias).reshape(1, -1),
            jnp.asarray(fc2_weight).T, jnp.asarray(fc2_bias).reshape(1, -1))


def text_classifier_forward(x, w1, b1, w2, b2, *, batch_tile=256):
    """Fused fc1 -> ReLU -> fc2.

    x : (B, input_dim) float32
    w1: (input_dim, hidden_dim)    b1: (1, hidden_dim)
    w2: (hidden_dim, output_dim)   b2: (1, output_dim)
    returns (B, output_dim) float32
    """
    B, d_in = x.shape
    d_hid = w1.shape[1]
    d_out = w2.shape[1]

    cost = pl.CostEstimate(
        flops=2 * B * (d_in * d_hid + d_hid * d_out),
        transcendentals=0,
        bytes_accessed=4 * (B * d_in + d_in * d_hid + d_hid
                            + d_hid * d_out + d_out + B * d_out),
    )

    if B <= batch_tile:
        # Small-batch / launch-overhead-bound regime: single block, no grid,
        # no pipeline prologue.  Whole (unpadded) arrays live in VMEM.
        spec = pl.BlockSpec(memory_space=pltpu.MemorySpace.VMEM)
        return pl.pallas_call(
            _mlp_kernel,
            out_shape=jax.ShapeDtypeStruct((B, d_out), x.dtype),
            in_specs=[spec] * 5,
            out_specs=spec,
            cost_estimate=cost,
        )(x, w1, b1, w2, b2)

    # Large-batch regime: 1-D grid over batch.  Weights/biases stay VMEM
    # resident (index_map pinned to block 0); x/out are tiled so the next
    # batch tile's DMA overlaps the current matmuls.  Batch axis is
    # "parallel" so v7x's two TensorCores split it (no-op on v5e/v6e).
    tb = batch_tile
    grid = (pl.cdiv(B, tb),)
    return pl.pallas_call(
        _mlp_kernel,
        out_shape=jax.ShapeDtypeStruct((B, d_out), x.dtype),
        grid=grid,
        in_specs=[
            pl.BlockSpec((tb, d_in), lambda i: (i, 0)),
            pl.BlockSpec((d_in, d_hid), lambda i: (0, 0)),
            pl.BlockSpec((1, d_hid), lambda i: (0, 0)),
            pl.BlockSpec((d_hid, d_out), lambda i: (0, 0)),
            pl.BlockSpec((1, d_out), lambda i: (0, 0)),
        ],
        out_specs=pl.BlockSpec((tb, d_out), lambda i: (i, 0)),
        compiler_params=pltpu.CompilerParams(
            dimension_semantics=("parallel",)),
        cost_estimate=cost,
    )(x, w1, b1, w2, b2)


def _reference(x, w1, b1, w2, b2):
    h = jnp.maximum(x @ w1 + b1, 0.0)
    return h @ w2 + b2


if __name__ == "__main__":
    # Shapes implied by the module: x is (batch, input_dim).
    batch, input_dim, hidden_dim, output_dim = 8, 32, 32, 8

    key = jax.random.PRNGKey(0)
    kx, kw1, kb1, kw2, kb2, kx2 = jax.random.split(key, 6)

    x = jax.random.normal(kx, (batch, input_dim), dtype=jnp.float32)

    # PyTorch nn.Linear layout + init: weight (out, in), U(-1/sqrt(fan_in), ...).
    lim1 = 1.0 / (input_dim ** 0.5)
    lim2 = 1.0 / (hidden_dim ** 0.5)
    fc1_w = jax.random.uniform(kw1, (hidden_dim, input_dim),
                               minval=-lim1, maxval=lim1, dtype=jnp.float32)
    fc1_b = jax.random.uniform(kb1, (hidden_dim,),
                               minval=-lim1, maxval=lim1, dtype=jnp.float32)
    fc2_w = jax.random.uniform(kw2, (output_dim, hidden_dim),
                               minval=-lim2, maxval=lim2, dtype=jnp.float32)
    fc2_b = jax.random.uniform(kb2, (output_dim,),
                               minval=-lim2, maxval=lim2, dtype=jnp.float32)

    # One-time model prep (outside the per-forward path).
    w1, b1, w2, b2 = prepare_params(fc1_w, fc1_b, fc2_w, fc2_b)

    fwd = jax.jit(text_classifier_forward)

    # Small-batch (single-block) path.
    out = jax.block_until_ready(fwd(x, w1, b1, w2, b2))
    ref = _reference(x, w1, b1, w2, b2)
    assert out.shape == (batch, output_dim)
    assert jnp.allclose(out, ref, atol=1e-5, rtol=1e-5), "mismatch (small batch)"

    # Large-batch (gridded, weight-resident) path.
    big_batch = 512
    x_big = jax.random.normal(kx2, (big_batch, input_dim), dtype=jnp.float32)
    out_big = jax.block_until_ready(fwd(x_big, w1, b1, w2, b2))
    ref_big = _reference(x_big, w1, b1, w2, b2)
    assert out_big.shape == (big_batch, output_dim)
    assert jnp.allclose(out_big, ref_big, atol=1e-5, rtol=1e-5), "mismatch (grid)"

    print("KERNEL_OK")
</pallas_src>

<mosaic_0001>
module attributes {stable_mosaic.version = 11 : i64} {
  func.func @_mlp_kernel(%arg0: memref<8x32xf32, #tpu.memory_space<vmem>>, %arg1: memref<32x32xf32, #tpu.memory_space<vmem>>, %arg2: memref<1x32xf32, #tpu.memory_space<vmem>>, %arg3: memref<32x8xf32, #tpu.memory_space<vmem>>, %arg4: memref<1x8xf32, #tpu.memory_space<vmem>>, %arg5: memref<8x8xf32, #tpu.memory_space<vmem>>) attributes {dimension_semantics = [], scalar_prefetch = 0 : i64, scratch_operands = 0 : i64, tpu.core_type = #tpu.core_type<tc>} {
    %c0 = arith.constant 0 : index
    %c0_0 = arith.constant 0 : index
    %0 = vector.load %arg0[%c0, %c0_0] : memref<8x32xf32, #tpu.memory_space<vmem>>, vector<8x32xf32>
    %c0_1 = arith.constant 0 : index
    %c0_2 = arith.constant 0 : index
    %1 = vector.load %arg1[%c0_1, %c0_2] : memref<32x32xf32, #tpu.memory_space<vmem>>, vector<32x32xf32>
    %cst = arith.constant dense<0.000000e+00> : vector<8x32xf32>
    %2 = tpu.matmul %0, %1, %cst {dimension_numbers = #tpu.dot_dimension_numbers<[1], [0], [0], [1], [0, 0, 1, 1], [], []>} : vector<8x32xf32>, vector<32x32xf32>, vector<8x32xf32> -> vector<8x32xf32>
    %c0_3 = arith.constant 0 : index
    %c0_4 = arith.constant 0 : index
    %3 = vector.load %arg2[%c0_3, %c0_4] : memref<1x32xf32, #tpu.memory_space<vmem>>, vector<1x32xf32>
    %4 = vector.broadcast %3 : vector<1x32xf32> to vector<8x32xf32>
    %5 = arith.addf %2, %4 : vector<8x32xf32>
    %cst_5 = arith.constant 0.000000e+00 : f32
    %6 = vector.broadcast %cst_5 : f32 to vector<8x32xf32>
    %7 = arith.maximumf %5, %6 : vector<8x32xf32>
    %c0_6 = arith.constant 0 : index
    %c0_7 = arith.constant 0 : index
    %8 = vector.load %arg3[%c0_6, %c0_7] : memref<32x8xf32, #tpu.memory_space<vmem>>, vector<32x8xf32>
    %cst_8 = arith.constant dense<0.000000e+00> : vector<8x8xf32>
    %9 = tpu.matmul %7, %8, %cst_8 {dimension_numbers = #tpu.dot_dimension_numbers<[1], [0], [0], [1], [0, 0, 1, 1], [], []>} : vector<8x32xf32>, vector<32x8xf32>, vector<8x8xf32> -> vector<8x8xf32>
    %c0_9 = arith.constant 0 : index
    %c0_10 = arith.constant 0 : index
    %10 = vector.load %arg4[%c0_9, %c0_10] : memref<1x8xf32, #tpu.memory_space<vmem>>, vector<1x8xf32>
    %11 = vector.broadcast %10 : vector<1x8xf32> to vector<8x8xf32>
    %12 = arith.addf %9, %11 : vector<8x8xf32>
    %c0_11 = arith.constant 0 : index
    %c0_12 = arith.constant 0 : index
    %13 = vector.load %arg5[%c0_11, %c0_12] : memref<8x8xf32, #tpu.memory_space<vmem>>, vector<8x8xf32>
    tpu.vector_store %arg5[%c0_11, %c0_12], %12 {strides = array<i32>} : memref<8x8xf32, #tpu.memory_space<vmem>>, vector<8x8xf32>,
    return
  }
}

</mosaic_0001>

<bundles_post_ra>
// kernel: text_classifier_forward.1
= control target key start
LH: loop header
LB: loop body
LE: loop exit
PB: predicated region body
PF: predicated region fallthrough
CT: control target
= control target key end

     0   :  { %v284_v3 = vmov 0.0|0.0   ;;  %vm285_vm0 = vmmov 0   ;;  %v286_v6 = vmov 0.0   ;;  %s363_s0 = inlined_call_operand.vmem [shape: f32[8,32], index: 0, kind: input, shape index: {}]   ;;  %s364_s1 = inlined_call_operand.vmem [shape: f32[32,32], index: 1, kind: input, shape index: {}]   ;;  %s365_s2 = inlined_call_operand.vmem [shape: f32[1,32], index: 2, kind: input, shape index: {}]   ;;  %s366_s3 = inlined_call_operand.vmem [shape: f32[32,8], index: 3, kind: input, shape index: {}]   ;;  %s367_s4 = inlined_call_operand.vmem [shape: f32[1,8], index: 4, kind: input, shape index: {}]   ;;  %s368_s5 = inlined_call_operand.hbm [shape: f32[8,8], index: 5, kind: output, shape index: {}]  }
   0x1   :  { %v22_v0 = vld [vmem:[%s364_s1] sm:$0xff]  ;;  %v23_v1 = vld [vmem:[%s364_s1 + $0x8] sm:$0xff]  ;;  %v24_v2 = vld [vmem:[%s364_s1 + $0x10] sm:$0xff]  ;;  %244 = vmatprep.subr.bf16.mxu0 %v284_v3  ;;  %230 = vmatprep.mubr.msk.f32.mxu0 %vm285_vm0, %v286_v6 }
   0x2   :  { %v245_v4 = vpack.c.bf16 %v23_v1, %v22_v0  ;;  %v25_v5 = vld [vmem:[%s364_s1 + $0x18] sm:$0xff]  ;;  %v108_v7 = vld [vmem:[%s366_s3] sm:$0xff]  ;;  %250 = vmatprep.subr.bf16.mxu1 %v284_v3  ;;  %v109_v8 = vld [vmem:[%s366_s3 + $0x8] sm:$0xff]  ;;  %241 = vmatprep.mubr.msk.f32.mxu1 %vm285_vm0, %v286_v6 }
   0x3   :  { %10 = vsyncpa [#allocation3], 0  ;;  %v248_v9 = vpack.c.bf16 %v25_v5, %v24_v2  ;;  %v251_v10 = vpack.c.bf16 %v109_v8, %v108_v7  ;;  %v21_v11 = vld [vmem:[%s363_s0] sm:$0xff]  ;;  %vm33_vm1 = vcmask 261120   ;;  %v110_v12 = vld [vmem:[%s366_s3 + $0x10] sm:$0xff]  ;;  %s287_s13 = smov [#allocation2]  }
   0x4   :  { %246 = vmatpush3.bf16.msra.mxu0 %v245_v4  ;;  %v111_v13 = vld [vmem:[%s366_s3 + $0x18] sm:$0xff]  ;;  %v208_v15 = vld [vmem:[%s365_s2] ss:$0 sm:$0xff]  ;;  %s200_s14 = sshll.u32 %s287_s13, 4  ;;  %vm192_vm2 = vcmask 64512   ;;  %s201_s14 = int_to_ptr.vmem [resolvable:$true] %s200_s14 }
   0x5   :  { %247 = vmatprep.subr.bf16.mxu0 %v284_v3  ;;  %252 = vmatpush3.bf16.msra.mxu1 %v251_v10  ;;  %v254_v14 = vpack.c.bf16 %v111_v13, %v110_v12  ;;  %v210_v20 = vld [vmem:[%s367_s4] ss:$0 sm:$0xff]  ;;  %s260_s3 = scalar_lea.vmem %s201_s14, 128  ;;  %p265_p1 = scmp.lt.s32.totalorder %s201_s14, %s201_s14 }
   0x6   :  { %253 = vmatprep.subr.bf16.mxu1 %v284_v3  ;;  %p261_p0 = scmp.ne.s32.totalorder %s201_s14, %s260_s3  ;;  %p266_p2 = scmp.lt.s32.totalorder %s260_s3, %s260_s3 }
   0x8   :  { %249 = vmatpush3.bf16.msra.mxu0 %v248_v9  ;;  %p267_p3 = por %p266_p2, %p265_p1 }
   0x9   :  { %255 = vmatpush3.bf16.msra.mxu1 %v254_v14 }
   0xa   :  { %p268_p4 = pnand %p267_p3, %p261_p0 }
   0xb   :  { %231 = vmatmul.mubr.msk.f32.vlgmr.msra.gmra.mrb[0].mxu0 %vm33_vm1, %v21_v11 }
  0xde   :  { %v103_v16 = vpop.f32.mrb[0].mxu0 }
  0xdf   :  { %v104_v17 = vadd.f32 %v208_v15, %v103_v16  ;;  %v232_v18 = vpop.f32.mrb[1].mxu0 }
  0xe1   :  { %v107_v19 = vmax.f32 %v104_v17, 0.0 }
  0xe3   :  { %242 = vmatmul.mubr.msk.f32.vlgmr.msra.gmra.mrb[0].mxu1 %vm33_vm1, %v107_v19 }
 0x1b6   :  { %v188_v21 = vpop.f32.mrb[0].mxu1 }
 0x1b7   :  { %v189_v22 = vadd.f32 %v210_v20, %v188_v21  ;;  %v243_v23 = vpop.f32.mrb[1].mxu1 }
 0x1b9   :  { %193 = vst.msk [vmem:[#allocation2] sm:$0xff] %vm192_vm2, %v189_v22 }
 0x1ba   :  { %271 = shalt.err (!%p268_p4)
}
 0x1bb   :  { %s272_s16 = scalar_lea.hbm %s368_s5, 128 }
 0x1bc   :  { %p273_p5 = scmp.ne.s32.totalorder %s368_s5, %s272_s16  ;;  %p276_p6 = scmp.lt.u32.totalorder %s272_s16, %s368_s5 }
 0x1be   :  { %p278_p7 = pnand %p276_p6, %p273_p5 }
 0x1c0   :  { %281 = shalt.err (!%p278_p7)
}
 0x1c1   :  { %203 = dma.vmem_to_hbm [thread:$0]  %s201_s14, 128, %s368_s5, [#allocation3]  }
 0x1c2   :  { %282 = dma.done.wait [#allocation3], 128  }
 0x1c3   :  { %283 = vsyncadd [#allocation3], 4294967168 }
 0x1c4   :  { %207 = vsyncpa [#allocation3], 1 }

</bundles_post_ra>
